<compile_context>
chip_gen: v6e
topology: v6e:2x2x1
jax: 0.10.0
libtpu: 0.0.40
codegen_flags: <defaults>
</compile_context>

<pallas_src>
import math
import jax
import jax.numpy as jnp
from jax import lax
from jax.experimental import pallas as pl
from jax.experimental.pallas import tpu as pltpu


def _embed_kernel(x_ref, w_ref, scale_ref, shift_ref, o_ref):
    # x_ref:     (tile_n, 3)   points-major tile (no wrapper transpose)
    # w_ref:     (C, 3)        Conv1d(3->C, k=1, bias=False) weight
    # scale/shift: (C, 1)      folded BatchNorm1d (eval) per-channel affine
    # o_ref:     (C, tile_n)   lane-dense output tile
    x = x_ref[...]
    w = w_ref[...]
    # Conv1d(k=1): y[c, n] = sum_k w[c, k] * x[n, k]  (contract the size-3 axis)
    y = lax.dot_general(w, x, (((1,), (1,)), ((), ())),
                        preferred_element_type=jnp.float32)      # (C, tile_n)
    # LeakyReLU(negative_slope=0.2)
    y = jnp.where(y > 0, y, 0.2 * y)
    # BatchNorm1d (eval, folded); Dropout == identity at inference
    o_ref[...] = (y * scale_ref[...] + shift_ref[...]).astype(o_ref.dtype)


def pointcloud_embed_forward(pointcloud, w, gamma, beta, running_mean,
                             running_var, eps=1e-5, max_tile_n=512):
    """pointcloud: (B, N, 3) float -> (B, C, N) float32, C = w.shape[0]."""
    B, N, _ = pointcloud.shape
    C = w.shape[0]

    # Lane-dense N tile: multiple of 128, capped at max_tile_n.
    tile_n = min(max_tile_n, max(128, ((N + 127) // 128) * 128))
    n_pad = ((N + tile_n - 1) // tile_n) * tile_n

    x = pointcloud.astype(jnp.float32)
    if n_pad != N:
        x = jnp.pad(x, ((0, 0), (0, n_pad - N), (0, 0)))

    # Fold BatchNorm1d running stats into per-channel scale/shift.
    # (NOT folded into W: LeakyReLU is not positively homogeneous for
    #  negative scale, so the affine stays after the activation.)
    scale = (gamma / jnp.sqrt(running_var + eps)).astype(jnp.float32)
    shift = (beta - running_mean * scale).astype(jnp.float32)
    scale = scale.reshape(C, 1)
    shift = shift.reshape(C, 1)

    out = pl.pallas_call(
        _embed_kernel,
        out_shape=jax.ShapeDtypeStruct((B, C, n_pad), jnp.float32),
        grid_spec=pltpu.PrefetchScalarGridSpec(
            num_scalar_prefetch=0,
            grid=(B, n_pad // tile_n),
            in_specs=[
                pl.BlockSpec((None, tile_n, 3), lambda b, n: (b, n, 0)),  # x
                pl.BlockSpec((C, 3), lambda b, n: (0, 0)),                # W
                pl.BlockSpec((C, 1), lambda b, n: (0, 0)),                # BN scale
                pl.BlockSpec((C, 1), lambda b, n: (0, 0)),                # BN shift
            ],
            out_specs=pl.BlockSpec((None, C, tile_n), lambda b, n: (b, 0, n)),
        ),
        compiler_params=pltpu.CompilerParams(
            dimension_semantics=("parallel", "parallel")),
    )(x, w.astype(jnp.float32), scale, shift)

    if n_pad != N:
        out = out[:, :, :N]
    return out


def _reference(pointcloud, w, gamma, beta, running_mean, running_var, eps=1e-5):
    # y[b,c,n] = sum_k w[c,k] * x[b,n,k]   (Conv1d k=1, no bias, after permute)
    y = jnp.einsum('ck,bnk->bcn', w, pointcloud)
    y = jnp.where(y > 0, y, 0.2 * y)                           # LeakyReLU(0.2)
    inv = 1.0 / jnp.sqrt(running_var + eps)
    y = (y - running_mean[None, :, None]) * inv[None, :, None]
    y = y * gamma[None, :, None] + beta[None, :, None]         # BatchNorm1d (eval)
    return y                                                   # Dropout: identity


if __name__ == "__main__":
    depth = 2                         # node_count = 8**2 = 64 output channels
    node_count = int(math.pow(8, depth))

    key = jax.random.PRNGKey(0)
    k_x, k_w, k_g, k_b, k_m, k_v, k_x2 = jax.random.split(key, 7)

    # Conv1d(3, node_count, k=1, bias=False) weight, squeezed to (C, 3)
    w = 0.1 * jax.random.normal(k_w, (node_count, 3), dtype=jnp.float32)
    # BatchNorm1d(node_count) parameters / running stats
    gamma = 1.0 + 0.1 * jax.random.normal(k_g, (node_count,), dtype=jnp.float32)
    beta = 0.1 * jax.random.normal(k_b, (node_count,), dtype=jnp.float32)
    running_mean = 0.05 * jax.random.normal(k_m, (node_count,), dtype=jnp.float32)
    running_var = jnp.abs(1.0 + 0.1 * jax.random.normal(
        k_v, (node_count,), dtype=jnp.float32))

    # Test 1: small N (module-scale toy shape) -> padded to one 128-wide tile.
    B, N = 2, 16
    pointcloud = jax.random.normal(k_x, (B, N, 3), dtype=jnp.float32)
    out = jax.block_until_ready(
        pointcloud_embed_forward(pointcloud, w, gamma, beta,
                                 running_mean, running_var))
    ref = _reference(pointcloud, w, gamma, beta, running_mean, running_var)
    assert out.shape == (B, node_count, N), out.shape
    assert jnp.allclose(out, ref, atol=1e-5, rtol=1e-5), \
        float(jnp.max(jnp.abs(out - ref)))

    # Test 2: larger, non-tile-multiple N -> exercises N tiling + pad/slice.
    B2, N2 = 2, 1280
    pointcloud2 = jax.random.normal(k_x2, (B2, N2, 3), dtype=jnp.float32)
    out2 = jax.block_until_ready(
        pointcloud_embed_forward(pointcloud2, w, gamma, beta,
                                 running_mean, running_var))
    ref2 = _reference(pointcloud2, w, gamma, beta, running_mean, running_var)
    assert out2.shape == (B2, node_count, N2), out2.shape
    assert jnp.allclose(out2, ref2, atol=1e-5, rtol=1e-5), \
        float(jnp.max(jnp.abs(out2 - ref2)))

    print("KERNEL_OK")
</pallas_src>

<mosaic_0001>
module attributes {stable_mosaic.version = 11 : i64} {
  func.func @_embed_kernel(%arg0: i32, %arg1: i32, %arg2: memref<1x128x3xf32, #tpu.memory_space<vmem>>, %arg3: memref<64x3xf32, #tpu.memory_space<vmem>>, %arg4: memref<64x1xf32, #tpu.memory_space<vmem>>, %arg5: memref<64x1xf32, #tpu.memory_space<vmem>>, %arg6: memref<1x64x128xf32, #tpu.memory_space<vmem>>) attributes {dimension_semantics = [#tpu.dimension_semantics<parallel>, #tpu.dimension_semantics<parallel>], iteration_bounds = array<i64: 2, 1>, scalar_prefetch = 0 : i64, scratch_operands = 0 : i64, tpu.core_type = #tpu.core_type<tc>, window_params = [{transform_indices = @transform_0, window_bounds = array<i64: 1, 128, 3>}, {pipeline_mode = #tpu.pipeline_mode<synchronous>, transform_indices = @transform_1, window_bounds = array<i64: 64, 3>}, {pipeline_mode = #tpu.pipeline_mode<synchronous>, transform_indices = @transform_2, window_bounds = array<i64: 64, 1>}, {pipeline_mode = #tpu.pipeline_mode<synchronous>, transform_indices = @transform_3, window_bounds = array<i64: 64, 1>}, {transform_indices = @transform_4, window_bounds = array<i64: 1, 64, 128>}]} {
    %c0 = arith.constant 0 : index
    %c0_0 = arith.constant 0 : index
    %c0_1 = arith.constant 0 : index
    %0 = vector.load %arg2[%c0, %c0_0, %c0_1] : memref<1x128x3xf32, #tpu.memory_space<vmem>>, vector<1x128x3xf32>
    %1 = vector.shape_cast %0 : vector<1x128x3xf32> to vector<128x3xf32>
    %c0_2 = arith.constant 0 : index
    %c0_3 = arith.constant 0 : index
    %2 = vector.load %arg3[%c0_2, %c0_3] : memref<64x3xf32, #tpu.memory_space<vmem>>, vector<64x3xf32>
    %cst = arith.constant dense<0.000000e+00> : vector<64x128xf32>
    %3 = tpu.matmul %2, %1, %cst {dimension_numbers = #tpu.dot_dimension_numbers<[1], [1], [0], [0], [0, 0, 1, 0], [], []>} : vector<64x3xf32>, vector<128x3xf32>, vector<64x128xf32> -> vector<64x128xf32>
    %cst_4 = arith.constant 0.000000e+00 : f32
    %4 = vector.broadcast %cst_4 : f32 to vector<64x128xf32>
    %5 = arith.cmpf ogt, %3, %4 : vector<64x128xf32>
    %cst_5 = arith.constant 2.000000e-01 : f32
    %6 = vector.broadcast %cst_5 : f32 to vector<64x128xf32>
    %7 = arith.mulf %6, %3 : vector<64x128xf32>
    %8 = arith.select %5, %3, %7 : vector<64x128xi1>, vector<64x128xf32>
    %c0_6 = arith.constant 0 : index
    %c0_7 = arith.constant 0 : index
    %9 = vector.load %arg4[%c0_6, %c0_7] : memref<64x1xf32, #tpu.memory_space<vmem>>, vector<64x1xf32>
    %10 = vector.broadcast %9 : vector<64x1xf32> to vector<64x128xf32>
    %11 = arith.mulf %8, %10 : vector<64x128xf32>
    %c0_8 = arith.constant 0 : index
    %c0_9 = arith.constant 0 : index
    %12 = vector.load %arg5[%c0_8, %c0_9] : memref<64x1xf32, #tpu.memory_space<vmem>>, vector<64x1xf32>
    %13 = vector.broadcast %12 : vector<64x1xf32> to vector<64x128xf32>
    %14 = arith.addf %11, %13 : vector<64x128xf32>
    %c0_10 = arith.constant 0 : index
    %c0_11 = arith.constant 0 : index
    %c0_12 = arith.constant 0 : index
    %15 = vector.load %arg6[%c0_10, %c0_11, %c0_12] : memref<1x64x128xf32, #tpu.memory_space<vmem>>, vector<1x64x128xf32>
    %16 = vector.shape_cast %15 : vector<1x64x128xf32> to vector<64x128xf32>
    %17 = vector.shape_cast %14 : vector<64x128xf32> to vector<1x64x128xf32>
    tpu.vector_store %arg6[%c0_10, %c0_11, %c0_12], %17 {strides = array<i32>} : memref<1x64x128xf32, #tpu.memory_space<vmem>>, vector<1x64x128xf32>,
    return
  }
  func.func @transform_0(%arg0: i32, %arg1: i32) -> (i32, i32, i32) {
    %c0_i32 = arith.constant 0 : i32
    %c0_i32_0 = arith.constant 0 : i32
    return %arg0, %arg1, %c0_i32 : i32, i32, i32
  }
  func.func @transform_1(%arg0: i32, %arg1: i32) -> (i32, i32) {
    %c0_i32 = arith.constant 0 : i32
    %c0_i32_0 = arith.constant 0 : i32
    %c0_i32_1 = arith.constant 0 : i32
    return %c0_i32, %c0_i32_0 : i32, i32
  }
  func.func @transform_2(%arg0: i32, %arg1: i32) -> (i32, i32) {
    %c0_i32 = arith.constant 0 : i32
    %c0_i32_0 = arith.constant 0 : i32
    %c0_i32_1 = arith.constant 0 : i32
    return %c0_i32, %c0_i32_0 : i32, i32
  }
  func.func @transform_3(%arg0: i32, %arg1: i32) -> (i32, i32) {
    %c0_i32 = arith.constant 0 : i32
    %c0_i32_0 = arith.constant 0 : i32
    %c0_i32_1 = arith.constant 0 : i32
    return %c0_i32, %c0_i32_0 : i32, i32
  }
  func.func @transform_4(%arg0: i32, %arg1: i32) -> (i32, i32, i32) {
    %c0_i32 = arith.constant 0 : i32
    %c0_i32_0 = arith.constant 0 : i32
    return %arg0, %c0_i32, %arg1 : i32, i32, i32
  }
}

</mosaic_0001>

<bundles_post_ra>
// kernel: tpu_custom_call.1
= control target key start
LH: loop header
LB: loop body
LE: loop exit
PB: predicated region body
PF: predicated region fallthrough
CT: control target
= control target key end

     0   :  { %9 = vsyncpa [#allocation3], 0  ;;  %s1258_s0 = inlined_call_operand.vmem [shape: f32[2,128,3], index: 0, kind: input, shape index: {}]   ;;  %s1259_s1 = inlined_call_operand.vmem [shape: f32[64,3], index: 1, kind: input, shape index: {}]   ;;  %s1260_s2 = inlined_call_operand.vmem [shape: f32[64,1], index: 2, kind: input, shape index: {}]   ;;  %s1261_s3 = inlined_call_operand.vmem [shape: f32[64,1], index: 3, kind: input, shape index: {}]   ;;  %s1262_s4 = inlined_call_operand.hbm [shape: f32[2,64,128], index: 4, kind: output, shape index: {}]  }
   0x1   :  { %11 = vsyncpa [#allocation3 + $0x1], 0  ;;  %s971_s15 = smov 0   ;;  %s973_s16 = smov 0  }
   0x2   :  { %s975_s17 = smov 0   ;;  %s977_s18 = smov 0  }
   0x3   :  { %s979_s19 = smov 0   ;;  %s981_s20 = smov 0  }
   0x4 LB: > { %s665_s21 = sadd.s32 4294967295, %s940_s20   ;;  %s666_s22 = sadd.s32 4294967294, %s940_s20   ;;  %s940_s20 = sphi %s981_s20, %s17_s20   ;;  %s936_s19 = sphi %s979_s19, %s1269_s19   ;;  %s932_s18 = sphi %s977_s18, %s1268_s18   ;;  %s928_s17 = sphi %s975_s17, %s1267_s17   ;;  %s924_s16 = sphi %s973_s16, %s1266_s16   ;;  %s920_s15 = sphi %s971_s15, %s1265_s15  }
   0x5   : > { %s29_s23 = sadd.s32 1, %s936_s19  ;;  %s129_s24 = sadd.s32 1, %s928_s17 }
   0x6   : > { %p31_p0 = scmp.ge.s32.totalorder %s29_s23, 2  ;;  %p139_p1 = scmp.ne.s32.totalorder %s928_s17, %s924_s16 }
   0x7   : > { %p140_p2 = scmp.eq.s32.totalorder %s665_s21, 1  ;;  %p145_p3 = scmp.ne.s32.totalorder %s924_s16, %s920_s15 }
   0x8   : > { %s1271_s23 = smov (%p31_p0, %s29_s23), 0  ;;  %p146_p5 = scmp.eq.s32.totalorder %s666_s22, 1 }
   0x9   : > { %p1011_p4 = por %p140_p2, %p139_p1  ;;  %s124_s26 = ssub.s32 %s936_s19, %s1271_s23 }
   0xa   : > { %p669_p6 = scmp.ge.s32.totalorder %s940_s20, 1  ;;  %p127_p7 = scmp.eq.s32.totalorder %s124_s26, 0 }
   0xb   : > { %p1018_p8 = por %p146_p5, %p145_p3  ;;  %p186_p9 = scmp.lt.s32.totalorder %s940_s20, 3 }
   0xc   : > { %s1024_s28 = scalar_select %p127_p7, %s928_s17, %s129_s24  }
   0xd   : > { %p187_p10 = pnand %p669_p6, %p186_p9 }
   0xe   : > { %p217_p11 = scmp.lt.s32.totalorder (!%p187_p10), %s932_s18, 1  ;;  %s213_s9 = sand.u32 (!%p187_p10), 1, %s924_s16  }
   0xf   : > { %190 = sbr.rel (%p187_p10) target bundleno = 311 (0x137), region = 36  ;;  %s670_s10 = sshll.u32 (!%p187_p10), %s213_s9, 6 }
  0x10   : > { %s215_s11 = scalar_lea.vmem (!%p187_p10), [#allocation2], %s670_s10  ;;  %s943_s26 = smov (!%p187_p10), [#allocation2]  }
  0x11   : > { %s587_s13 = sshll.u32 (!%p187_p10), %s215_s11, 4  ;;  %s868_s29 = sshll.u32 (!%p187_p10), %s943_s26, 4  ;;  %s1209_s13 = int_to_ptr.vmem [resolvable:$true] %s587_s13  ;;  %s869_s29 = int_to_ptr.vmem [resolvable:$false] %s868_s29 }
  0x12   : > { %s870_s30 = scalar_lea.vmem (!%p187_p10), %s869_s29, 2048  ;;  %p871_p1 = scmp.lt.s32.totalorder (!%p187_p10), %s1209_s13, %s869_s29 }
  0x14   : > { %vm250_vm0 = vcmask 23552   ;;  %v242_v0 = vld [vmem:[%s1259_s1] sm:$0xff]  ;;  %s218_s7 = scalar_select %p217_p11, %s932_s18, 1  ;;  %v942_v2 = vmov 0   ;;  %v454_v3 = vld [vmem:[%s1260_s2 + $0x10] sm:$0xff]  ;;  %v455_v7 = vld [vmem:[%s1260_s2 + $0x18] sm:$0xff] }
  0x15   : > { %v246_v1 = vld [vmem:[%s1259_s1 + $0x20] sm:$0xff]  ;;  %760 = vmatprep.mubr.msk.f32.mxu0 %vm250_vm0, %v242_v0  ;;  %863 = vset.pattern.permute.xlu1 %v942_v2  ;;  %v453_v8 = vld [vmem:[%s1260_s2 + $0x8] sm:$0xff]  ;;  %v459_v13 = vld [vmem:[%s1260_s2 + $0x38] sm:$0xff] }
  0x16   : > { %766 = vmatprep.mubr.msk.f32.mxu1 %vm250_vm0, %v246_v1  ;;  %862 = vset.pattern.permute.xlu0 %v942_v2  ;;  %v452_v4 = vld [vmem:[%s1260_s2] sm:$0xff]  ;;  %s702_s12 = sshll.u32 %s218_s7, 7  ;;  %v457_v10 = vld [vmem:[%s1260_s2 + $0x28] sm:$0xff]  ;;  %v458_v14 = vld [vmem:[%s1260_s2 + $0x30] sm:$0xff] }
  0x17   : > { %472 = vperm.xlu1 %863, %v454_v3   ;;  %462 = vperm.xlu0 %862, %v452_v4   ;;  %s1045_s21 = scalar_lea.vmem %s1258_s0, %s702_s12  ;;  %v456_v11 = vld [vmem:[%s1260_s2 + $0x20] sm:$0xff]  ;;  %v509_v16 = vld [vmem:[%s1261_s3 + $0x8] sm:$0xff]  ;;  %v511_v19 = vld [vmem:[%s1261_s3 + $0x18] sm:$0xff]  ;;  %s703_s12 = sshll.u32 %s932_s18, 10 }
  0x18   : > { %v241_v5 = vld [vmem:[%s1045_s21 + $0x78] sm:$0xff]  ;;  %v240_v6 = vld [vmem:[%s1045_s21 + $0x70] sm:$0xff]  ;;  %v239_v9 = vld [vmem:[%s1045_s21 + $0x68] sm:$0xff]  ;;  %s1207_s24 = scalar_lea.hbm %s1262_s4, %s703_s12  ;;  %s1213_s18 = scalar_lea.sflag [#allocation3], %s213_s9 }
  0x19   : > { %728 = vmatprep.subr.msk.mxu0 %vm250_vm0, %v241_v5  ;;  %772 = vmatprep.subr.msk.mxu1 %vm250_vm0, %v241_v5  ;;  %v238_v12 = vld [vmem:[%s1045_s21 + $0x60] sm:$0xff]  ;;  %v237_v15 = vld [vmem:[%s1045_s21 + $0x58] sm:$0xff]  ;;  %v236_v18 = vld [vmem:[%s1045_s21 + $0x50] sm:$0xff] }
  0x1a   : > { %729 = vmatpush3.xpose.msk.msra.mxu0 %vm250_vm0, %v241_v5  ;;  %788 = vmatpush3.xpose.msk.msra.mxu1 %vm250_vm0, %v241_v5  ;;  %v508_v17 = vld [vmem:[%s1261_s3] sm:$0xff]  ;;  %v510_v20 = vld [vmem:[%s1261_s3 + $0x10] sm:$0xff]  ;;  %v235_v21 = vld [vmem:[%s1045_s21 + $0x48] sm:$0xff] }
  0x1b   : > { %730 = vmatprep.subr.msk.mxu0 %vm250_vm0, %v240_v6  ;;  %773 = vmatprep.subr.msk.mxu1 %vm250_vm0, %v240_v6  ;;  %v513_v22 = vld [vmem:[%s1261_s3 + $0x28] sm:$0xff]  ;;  %v512_v23 = vld [vmem:[%s1261_s3 + $0x20] sm:$0xff]  ;;  %v515_v25 = vld [vmem:[%s1261_s3 + $0x38] sm:$0xff] }
  0x1c   : > { %477 = vperm.xlu1 %863, %v455_v7   ;;  %467 = vperm.xlu0 %862, %v453_v8   ;;  %v234_v24 = vld [vmem:[%s1045_s21 + $0x40] sm:$0xff]  ;;  %v514_v26 = vld [vmem:[%s1261_s3 + $0x30] sm:$0xff]  ;;  %v233_v27 = vld [vmem:[%s1045_s21 + $0x38] sm:$0xff] }
  0x1d   : > { %v232_v28 = vld [vmem:[%s1045_s21 + $0x30] sm:$0xff]  ;;  %v231_v29 = vld [vmem:[%s1045_s21 + $0x28] sm:$0xff]  ;;  %v230_v30 = vld [vmem:[%s1045_s21 + $0x20] sm:$0xff] }
  0x1e   : > { %731 = vmatpush3.xpose.msk.msra.mxu0 %vm250_vm0, %v240_v6  ;;  %789 = vmatpush3.xpose.msk.msra.mxu1 %vm250_vm0, %v240_v6  ;;  %v229_v31 = vld [vmem:[%s1045_s21 + $0x18] sm:$0xff]  ;;  %v228_v32 = vld [vmem:[%s1045_s21 + $0x10] sm:$0xff]  ;;  %v227_v33 = vld [vmem:[%s1045_s21 + $0x8] sm:$0xff] }
  0x1f   : > { %732 = vmatprep.subr.msk.mxu0 %vm250_vm0, %v239_v9  ;;  %774 = vmatprep.subr.msk.mxu1 %vm250_vm0, %v239_v9  ;;  %v226_v34 = vld [vmem:[%s1045_s21] sm:$0xff]  ;;  %v243_v35 = vld [vmem:[%s1259_s1 + $0x8] sm:$0xff]  ;;  %v244_v37 = vld [vmem:[%s1259_s1 + $0x10] sm:$0xff]  ;;  %s864_s21 = scalar_lea.vmem %s1209_s13, 1024 }
  0x20   : > { %487 = vperm.xlu1 %863, %v457_v10   ;;  %482 = vperm.xlu0 %862, %v456_v11   ;;  %v247_v36 = vld [vmem:[%s1259_s1 + $0x28] sm:$0xff]  ;;  %v248_v38 = vld [vmem:[%s1259_s1 + $0x30] sm:$0xff]  ;;  %v245_v39 = vld [vmem:[%s1259_s1 + $0x18] sm:$0xff]  ;;  %p865_p12 = scmp.ne.s32.totalorder %s1209_s13, %s864_s21  ;;  %p872_p2 = scmp.lt.s32.totalorder %s870_s30, %s864_s21 }
  0x21   : > { %v249_v40 = vld [vmem:[%s1259_s1 + $0x38] sm:$0xff] }
  0x22   : > { %733 = vmatpush3.xpose.msk.msra.mxu0 %vm250_vm0, %v239_v9  ;;  %790 = vmatpush3.xpose.msk.msra.mxu1 %vm250_vm0, %v239_v9  ;;  %p866_p13 = pnand %p865_p12, %p1011_p4  ;;  %p873_p3 = por %p872_p2, %p871_p1 }
  0x23   : > { %734 = vmatprep.subr.msk.mxu0 %vm250_vm0, %v238_v12  ;;  %775 = vmatprep.subr.msk.mxu1 %vm250_vm0, %v238_v12 }
  0x24   : > { %497 = vperm.xlu1 %863, %v459_v13   ;;  %492 = vperm.xlu0 %862, %v458_v14   ;;  %p867_p0 = pneg %p866_p13 }
  0x26   : > { %735 = vmatpush3.xpose.msk.msra.mxu0 %vm250_vm0, %v238_v12  ;;  %791 = vmatpush3.xpose.msk.msra.mxu1 %vm250_vm0, %v238_v12  ;;  %p874_p5 = pnand %p873_p3, %p867_p0 }
  0x27   : > { %736 = vmatprep.subr.msk.mxu0 %vm250_vm0, %v237_v15  ;;  %776 = vmatprep.subr.msk.mxu1 %vm250_vm0, %v237_v15 }
  0x28   : > { %523 = vperm.xlu1 %863, %v509_v16   ;;  %518 = vperm.xlu0 %862, %v508_v17  }
  0x2a   : > { %737 = vmatpush3.xpose.msk.msra.mxu0 %vm250_vm0, %v237_v15  ;;  %792 = vmatpush3.xpose.msk.msra.mxu1 %vm250_vm0, %v237_v15 }
  0x2b   : > { %738 = vmatprep.subr.msk.mxu0 %vm250_vm0, %v236_v18  ;;  %777 = vmatprep.subr.msk.mxu1 %vm250_vm0, %v236_v18 }
  0x2c   : > { %533 = vperm.xlu1 %863, %v511_v19   ;;  %528 = vperm.xlu0 %862, %v510_v20  }
  0x2e   : > { %739 = vmatpush3.xpose.msk.msra.mxu0 %vm250_vm0, %v236_v18  ;;  %793 = vmatpush3.xpose.msk.msra.mxu1 %vm250_vm0, %v236_v18 }
  0x2f   : > { %740 = vmatprep.subr.msk.mxu0 %vm250_vm0, %v235_v21  ;;  %778 = vmatprep.subr.msk.mxu1 %vm250_vm0, %v235_v21 }
  0x30   : > { %543 = vperm.xlu1 %863, %v513_v22   ;;  %538 = vperm.xlu0 %862, %v512_v23  }
  0x32   : > { %741 = vmatpush3.xpose.msk.msra.mxu0 %vm250_vm0, %v235_v21  ;;  %794 = vmatpush3.xpose.msk.msra.mxu1 %vm250_vm0, %v235_v21 }
  0x33   : > { %742 = vmatprep.subr.msk.mxu0 %vm250_vm0, %v234_v24  ;;  %779 = vmatprep.subr.msk.mxu1 %vm250_vm0, %v234_v24 }
  0x34   : > { %553 = vperm.xlu1 %863, %v515_v25   ;;  %548 = vperm.xlu0 %862, %v514_v26  }
  0x36   : > { %743 = vmatpush3.xpose.msk.msra.mxu0 %vm250_vm0, %v234_v24  ;;  %795 = vmatpush3.xpose.msk.msra.mxu1 %vm250_vm0, %v234_v24 }
  0x37   : > { %744 = vmatprep.subr.msk.mxu0 %vm250_vm0, %v233_v27  ;;  %780 = vmatprep.subr.msk.mxu1 %vm250_vm0, %v233_v27 }
  0x3a   : > { %745 = vmatpush3.xpose.msk.msra.mxu0 %vm250_vm0, %v233_v27  ;;  %796 = vmatpush3.xpose.msk.msra.mxu1 %vm250_vm0, %v233_v27 }
  0x3b   : > { %746 = vmatprep.subr.msk.mxu0 %vm250_vm0, %v232_v28  ;;  %781 = vmatprep.subr.msk.mxu1 %vm250_vm0, %v232_v28 }
  0x3e   : > { %747 = vmatpush3.xpose.msk.msra.mxu0 %vm250_vm0, %v232_v28  ;;  %797 = vmatpush3.xpose.msk.msra.mxu1 %vm250_vm0, %v232_v28 }
  0x3f   : > { %748 = vmatprep.subr.msk.mxu0 %vm250_vm0, %v231_v29  ;;  %782 = vmatprep.subr.msk.mxu1 %vm250_vm0, %v231_v29 }
  0x42   : > { %749 = vmatpush3.xpose.msk.msra.mxu0 %vm250_vm0, %v231_v29  ;;  %798 = vmatpush3.xpose.msk.msra.mxu1 %vm250_vm0, %v231_v29 }
  0x43   : > { %750 = vmatprep.subr.msk.mxu0 %vm250_vm0, %v230_v30  ;;  %783 = vmatprep.subr.msk.mxu1 %vm250_vm0, %v230_v30 }
  0x46   : > { %751 = vmatpush3.xpose.msk.msra.mxu0 %vm250_vm0, %v230_v30  ;;  %799 = vmatpush3.xpose.msk.msra.mxu1 %vm250_vm0, %v230_v30 }
  0x47   : > { %752 = vmatprep.subr.msk.mxu0 %vm250_vm0, %v229_v31  ;;  %784 = vmatprep.subr.msk.mxu1 %vm250_vm0, %v229_v31 }
  0x4a   : > { %753 = vmatpush3.xpose.msk.msra.mxu0 %vm250_vm0, %v229_v31  ;;  %800 = vmatpush3.xpose.msk.msra.mxu1 %vm250_vm0, %v229_v31 }
  0x4b   : > { %754 = vmatprep.subr.msk.mxu0 %vm250_vm0, %v228_v32  ;;  %785 = vmatprep.subr.msk.mxu1 %vm250_vm0, %v228_v32 }
  0x4e   : > { %755 = vmatpush3.xpose.msk.msra.mxu0 %vm250_vm0, %v228_v32  ;;  %801 = vmatpush3.xpose.msk.msra.mxu1 %vm250_vm0, %v228_v32 }
  0x4f   : > { %756 = vmatprep.subr.msk.mxu0 %vm250_vm0, %v227_v33  ;;  %786 = vmatprep.subr.msk.mxu1 %vm250_vm0, %v227_v33 }
  0x52   : > { %757 = vmatpush3.xpose.msk.msra.mxu0 %vm250_vm0, %v227_v33  ;;  %802 = vmatpush3.xpose.msk.msra.mxu1 %vm250_vm0, %v227_v33 }
  0x53   : > { %758 = vmatprep.subr.msk.mxu0 %vm250_vm0, %v226_v34  ;;  %787 = vmatprep.subr.msk.mxu1 %vm250_vm0, %v226_v34 }
  0x56   : > { %759 = vmatpush3.xpose.msk.msra.mxu0 %vm250_vm0, %v226_v34  ;;  %803 = vmatpush3.xpose.msk.msra.mxu1 %vm250_vm0, %v226_v34 }
  0x59   : > { %761 = vmatmul.mubr.msk.f32.vlgmr.msra.gmra.mxu0 %vm250_vm0, %v243_v35  ;;  %767 = vmatmul.mubr.msk.f32.vlgmr.msra.gmra.mxu1 %vm250_vm0, %v247_v36 }
  0x5a   : > { %763 = vmatprep.mubr.msk.f32.mxu0 %vm250_vm0, %v244_v37  ;;  %769 = vmatprep.mubr.msk.f32.mxu1 %vm250_vm0, %v248_v38 }
  0x5d   : > { %764 = vmatmul.mubr.msk.f32.gmra.mxu0 %vm250_vm0, %v245_v39  ;;  %770 = vmatmul.mubr.msk.f32.gmra.mxu1 %vm250_vm0, %v249_v40 }
  0x92   : > { %v1193_v41 = vpop.permute.xlu1 %472  ;;  %v463_v42 = vpop.permute.xlu0 %462 }
  0x97   : > { %v478_v43 = vpop.permute.xlu1 %477  ;;  %v468_v44 = vpop.permute.xlu0 %467 }
  0x9b   : > { %v488_v45 = vpop.permute.xlu1 %487  ;;  %v483_v46 = vpop.permute.xlu0 %482 }
  0x9f   : > { %v498_v47 = vpop.permute.xlu1 %497  ;;  %v1195_v48 = vpop.permute.xlu0 %492 }
  0xa3   : > { %v524_v49 = vpop.permute.xlu1 %523  ;;  %v519_v50 = vpop.permute.xlu0 %518 }
  0xa7   : > { %v534_v51 = vpop.permute.xlu1 %533  ;;  %v529_v54 = vpop.permute.xlu0 %528 }
  0xab   : > { %v544_v3 = vpop.permute.xlu1 %543  ;;  %v539_v12 = vpop.permute.xlu0 %538 }
  0xaf   : > { %v554_v25 = vpop.permute.xlu1 %553  ;;  %v549_v30 = vpop.permute.xlu0 %548 }
 0x119   : > { %v762_v52 = vpop.f32.mrf.mxu0  ;;  %v768_v53 = vpop.f32.mrf.mxu1 }
 0x11a   : > { %vm429_vm1 = vcmp.gt.f32.partialorder %v762_v52, 0.0  ;;  %v437_v55 = vmul.f32 0.2, %v762_v52  ;;  %vm433_vm2 = vcmp.gt.f32.partialorder %v768_v53, 0.0  ;;  %v441_v56 = vmul.f32 0.2, %v768_v53 }
 0x11b   : > { %v389_v57 = vpop.f32.mrf.mxu0  ;;  %v409_v58 = vpop.f32.mrf.mxu1 }
 0x11c   : > { %v445_v59 = vsel %vm429_vm1, %v762_v52, %v437_v55  ;;  %v449_v60 = vsel %vm433_vm2, %v768_v53, %v441_v56  ;;  %vm428_vm3 = vcmp.gt.f32.partialorder %v389_v57, 0.0  ;;  %v436_v61 = vmul.f32 0.2, %v389_v57 }
 0x11d   : > { %v501_v62 = vmul.f32 %v468_v44, %v445_v59  ;;  %v505_v63 = vmul.f32 %v488_v45, %v449_v60  ;;  %vm432_vm4 = vcmp.gt.f32.partialorder %v409_v58, 0.0  ;;  %v440_v0 = vmul.f32 0.2, %v409_v58  ;;  %v765_v1 = vpop.f32.mrf.mxu0  ;;  %v771_v2 = vpop.f32.mrf.mxu1 }
 0x11e   : > { %v444_v4 = vsel %vm428_vm3, %v389_v57, %v436_v61  ;;  %vm431_vm5 = vcmp.gt.f32.partialorder %v765_v1, 0.0  ;;  %v439_v5 = vmul.f32 0.2, %v765_v1  ;;  %vm435_vm6 = vcmp.gt.f32.partialorder %v771_v2, 0.0 }
 0x11f   : > { %v557_v6 = vadd.f32 %v524_v49, %v501_v62  ;;  %v561_v7 = vadd.f32 %v544_v3, %v505_v63  ;;  %v500_v8 = vmul.f32 %v463_v42, %v444_v4  ;;  %v448_v9 = vsel %vm432_vm4, %v409_v58, %v440_v0  ;;  %v399_v10 = vpop.f32.mrf.mxu0  ;;  %v419_v11 = vpop.f32.mrf.mxu1 }
 0x120   : > { %v504_v13 = vmul.f32 %v483_v46, %v448_v9  ;;  %v447_v14 = vsel %vm431_vm5, %v765_v1, %v439_v5  ;;  %v443_v15 = vmul.f32 0.2, %v771_v2  ;;  %vm430_vm7 = vcmp.gt.f32.partialorder %v399_v10, 0.0 }
 0x121   : > { %565 = vst [vmem:[%s215_s11 + $0x8] sm:$0xff] %v557_v6  ;;  %569 = vst [vmem:[%s215_s11 + $0x28] sm:$0xff] %v561_v7  ;;  %v556_v16 = vadd.f32 %v519_v50, %v500_v8  ;;  %v503_v17 = vmul.f32 %v478_v43, %v447_v14  ;;  %v438_v18 = vmul.f32 0.2, %v399_v10  ;;  %vm434_vm8 = vcmp.gt.f32.partialorder %v419_v11, 0.0 }
 0x122   : > { %v560_v19 = vadd.f32 %v539_v12, %v504_v13  ;;  %v451_v20 = vsel %vm435_vm6, %v771_v2, %v443_v15  ;;  %v442_v21 = vmul.f32 0.2, %v419_v11 }
 0x123   : > { %564 = vst [vmem:[%s215_s11] sm:$0xff] %v556_v16  ;;  %v559_v22 = vadd.f32 %v534_v51, %v503_v17  ;;  %v507_v23 = vmul.f32 %v498_v47, %v451_v20  ;;  %v446_v24 = vsel %vm430_vm7, %v399_v10, %v438_v18 }
 0x124   : > { %568 = vst [vmem:[%s215_s11 + $0x20] sm:$0xff] %v560_v19  ;;  %v502_v26 = vmul.f32 %v1193_v41, %v446_v24  ;;  %v450_v27 = vsel %vm434_vm8, %v419_v11, %v442_v21 }
 0x125   : > { %567 = vst [vmem:[%s215_s11 + $0x18] sm:$0xff] %v559_v22  ;;  %v563_v28 = vadd.f32 %v554_v25, %v507_v23  ;;  %v506_v29 = vmul.f32 %v1195_v48, %v450_v27 }
 0x126   : > { %v558_v31 = vadd.f32 %v529_v54, %v502_v26 }
 0x127   : > { %571 = vst [vmem:[%s215_s11 + $0x38] sm:$0xff] %v563_v28  ;;  %v562_v32 = vadd.f32 %v549_v30, %v506_v29 }
 0x128   : > { %566 = vst [vmem:[%s215_s11 + $0x10] sm:$0xff] %v558_v31 }
 0x129   : > { %570 = vst [vmem:[%s215_s11 + $0x30] sm:$0xff] %v562_v32 }
 0x12a   : > { %877 = shalt.err (!%p874_p5)
}
 0x12b   : > { %s878_s5 = scalar_lea.hbm %s1207_s24, 1024  ;;  %s882_s8 = scalar_lea.hbm %s1262_s4, 2048 }
 0x12c   : > { %p879_p6 = scmp.ne.s32.totalorder %s1207_s24, %s878_s5  ;;  %p883_p10 = scmp.lt.s32.totalorder %s1207_s24, %s1262_s4 }
 0x12d   : > { %p884_p11 = scmp.lt.s32.totalorder %s882_s8, %s878_s5 }
 0x12e   : > { %p880_p7 = pnand %p879_p6, %p1011_p4 }
 0x12f   : > { %p885_p12 = por %p884_p11, %p883_p10 }
 0x130   : > { %p881_p9 = pneg %p880_p7 }
 0x132   : > { %p886_p13 = pnand %p885_p12, %p881_p9 }
 0x134   : > { %889 = shalt.err (!%p886_p13)
}
 0x135   : > { %s944_s11 = smov 128   ;;  %s945_s12 = smov 8  }
 0x136   : > { %804 = dma.vmem_to_hbm [thread:$0]  (%p1011_p4), %s1209_s13, 1024, %s1207_s24, %s1213_s18, %s944_s11, %s944_s11, %s945_s12  }
 0x137 PF: > { %p810_p0 = scmp.ge.s32.totalorder %s940_s20, 2  ;;  %s602_s14 = sand.u32 1, %s920_s15  }
 0x138   : > { %s603_s22 = scalar_lea.sflag [#allocation3], %s602_s14 }
 0x139   : > { %p807_p1 = pnand %p810_p0, %p1018_p8 }
 0x13b   : > { %p808_p2 = pneg %p807_p1 }
 0x13d   : > { %915 = dma.done.wait (%p808_p2), %s603_s22, 1024  }
 0x13e   : > { %917 = vsyncadd (%p808_p2), %s603_s22, 4294966272  ;;  %s17_s20 = sadd.s32 1, %s940_s20   ;;  %s1265_s15 = smov %s924_s16 }
 0x13f   : > { %p14_p3 = scmp.ge.s32.totalorder %s17_s20, 4   ;;  %s1266_s16 = smov %s928_s17 }
 0x140   : > { %s1267_s17 = smov %s1024_s28  ;;  %s1268_s18 = smov %s936_s19 }
 0x141   : > { %s1269_s19 = smov %s1271_s23  ;;  %16 = sbr.rel (!%p14_p3) target bundleno = 4 (0x4), region = 71 }
 0x146   :  { %608 = vsyncpa [#allocation3], 1 }
 0x147   :  { %610 = vsyncpa [#allocation3 + $0x1], 1 }

</bundles_post_ra>
